<compile_context>
chip_gen: v5e
topology: v5e:2x2
jax: 0.10.0
libtpu: 0.0.40
codegen_flags: <defaults>
</compile_context>

<pallas_src>
import functools

import jax
import jax.numpy as jnp
from jax import lax
from jax.experimental import pallas as pl
from jax.experimental.pallas import tpu as pltpu


# ----------------------------------------------------------------------------
# Pallas kernel: sub-pixel transposed conv, one matmul per (batch, row-strip)
# ----------------------------------------------------------------------------
def _subpixel_upconv_kernel(x_ref, w_ref, b_ref, o_ref):
    # x_ref: (1, Cin, L)        one batch element, one row strip (L = TH * W)
    # w_ref: (Cout*s*s, Cin)    rows ordered (co, ky, kx); block index is constant
    #                           across the grid so it is DMA'd once and stays resident
    # b_ref: (Cout*s*s, 1)      f32 bias, one entry per output phase row
    # o_ref: (1, Cout*s*s, L)   phase-major up-conv output (lane axis = flat spatial)
    y = jnp.dot(w_ref[...], x_ref[0], preferred_element_type=jnp.float32)
    o_ref[0] = (y + b_ref[...]).astype(o_ref.dtype)


# ----------------------------------------------------------------------------
# Tiling / VMEM heuristics
# ----------------------------------------------------------------------------
def _vmem_limit_bytes():
    """Per-generation scoped-VMEM limit: ~3/4 of physical VMEM.
    v5e/v6e (128 MiB) -> 96 MiB;  v7x (64 MiB) -> 48 MiB;  fallback is v7x-safe."""
    try:
        cap = int(pltpu.get_tpu_info().vmem_capacity_bytes)
    except Exception:
        cap = 64 * 1024 * 1024
    return max(32 * 1024 * 1024, min(cap * 3 // 4, 112 * 1024 * 1024))


def _pick_row_strip(H, W, bytes_per_lane, block_budget, want_multi_step,
                    target_lanes=32 * 1024):
    """Largest row-strip height TH dividing H such that:
       * TH*W (the lane count) is a multiple of 128, or the strip is the full image,
       * the double-buffered in+out blocks fit `block_budget` bytes,
       * >= 2 grid steps remain when `want_multi_step` (v7x: 2 TensorCores),
       * lanes stay <= target_lanes (diminishing returns past ~32k lanes)."""
    divisors = [th for th in range(1, H + 1) if H % th == 0]
    aligned = [th for th in divisors if (th * W) % 128 == 0 or th == H]
    pool = [th for th in aligned if bytes_per_lane * th * W <= block_budget]
    if not pool:                       # nothing fits: smallest legal strip
        pool = aligned[:1]
    if want_multi_step:
        multi = [th for th in pool if H // th >= 2]
        if multi:
            pool = multi
    capped = [th for th in pool if th * W <= target_lanes]
    if capped:
        pool = capped
    return max(pool)


# ----------------------------------------------------------------------------
# Pure-JAX path (reference, and fallback for up_kernel_size != stride)
# ----------------------------------------------------------------------------
def _lax_forward(params, tensor_a, tensor_b, up_kernel_size, stride=2):
    wa, ba = params["wa"], params["ba"]
    k = up_kernel_size
    w_oihw = jnp.transpose(wa, (1, 0, 2, 3))[:, :, ::-1, ::-1]
    up = lax.conv_general_dilated(
        tensor_a.astype(jnp.float32), w_oihw.astype(jnp.float32),
        window_strides=(1, 1),
        padding=[(k - 1, k - 1), (k - 1, k - 1)],
        lhs_dilation=(stride, stride), rhs_dilation=(1, 1),
        dimension_numbers=("NCHW", "OIHW", "NCHW"))
    up = (up + ba.reshape(1, -1, 1, 1).astype(jnp.float32)).astype(tensor_a.dtype)
    return jnp.concatenate([up, tensor_b.astype(up.dtype)], axis=1)


# ----------------------------------------------------------------------------
# Forward pass (NCHW in / NCHW out, matches the PyTorch module)
# ----------------------------------------------------------------------------
def up_copy_forward(params, tensor_a, tensor_b, up_kernel_size, stride=2):
    wa, ba = params["wa"], params["ba"]          # torch layouts: (Cin,Cout,k,k), (Cout,)
    N, Cin, H, W = tensor_a.shape
    Cout = wa.shape[1]
    s, k = stride, up_kernel_size
    Ho, Wo = (H - 1) * s + k, (W - 1) * s + k
    assert tensor_b.shape[0] == N and tensor_b.shape[2:] == (Ho, Wo), tensor_b.shape

    if k != s:
        # TODO(synk): up_kernel_size != stride needs per-phase multi-tap matmuls
        # with halo handling; use the XLA dilated-conv path for that case.
        return _lax_forward(params, tensor_a, tensor_b, k, s)

    act_dtype = tensor_a.dtype
    esize = tensor_a.dtype.itemsize
    R = Cout * s * s

    # (Cin, Cout, k, k) -> (Cout*k*k, Cin), rows ordered (co, ky, kx).
    # Weights in the activation dtype (bf16-capable); bias stays f32 for the epilogue.
    w_mat = jnp.transpose(wa, (1, 2, 3, 0)).reshape(R, Cin).astype(act_dtype)
    b_rep = jnp.repeat(ba, s * s).reshape(R, 1).astype(jnp.float32)

    vmem_limit = _vmem_limit_bytes()
    bytes_per_lane = 2 * (Cin + R) * esize        # double-buffered in + out blocks
    TH = _pick_row_strip(H, W, bytes_per_lane, vmem_limit // 2,
                         want_multi_step=(N < 2))
    n_strips = H // TH
    L = TH * W

    xa_flat = tensor_a.reshape(N, Cin, H * W)     # free view, no copy

    cost = pl.CostEstimate(
        flops=2 * N * R * Cin * H * W,
        transcendentals=0,
        bytes_accessed=(N * Cin * H * W + N * R * H * W) * esize
                       + R * Cin * esize + R * 4)

    up_phase = pl.pallas_call(
        _subpixel_upconv_kernel,
        out_shape=jax.ShapeDtypeStruct((N, R, H * W), act_dtype),
        grid_spec=pltpu.PrefetchScalarGridSpec(
            num_scalar_prefetch=0,
            grid=(N, n_strips),
            in_specs=[
                pl.BlockSpec((1, Cin, L), lambda n, t: (n, 0, t)),
                pl.BlockSpec((R, Cin), lambda n, t: (0, 0)),
                pl.BlockSpec((R, 1), lambda n, t: (0, 0)),
            ],
            out_specs=pl.BlockSpec((1, R, L), lambda n, t: (n, 0, t)),
        ),
        compiler_params=pltpu.CompilerParams(
            dimension_semantics=("parallel", "parallel"),
            vmem_limit_bytes=vmem_limit),
        cost_estimate=cost,
    )(xa_flat, w_mat, b_rep)

    # Depth-to-space + channel concat: pure data movement, one XLA fusion.
    # TODO(synk): fold into the kernel's output block once the stride-2 lane
    # interleave relayout lowers robustly in Mosaic (saves the up_phase round trip).
    up = (up_phase.reshape(N, Cout, s, s, H, W)
                  .transpose(0, 1, 4, 2, 5, 3)
                  .reshape(N, Cout, Ho, Wo))
    return jnp.concatenate([up, tensor_b.astype(up.dtype)], axis=1)


# ----------------------------------------------------------------------------
# Parameter init (deterministic, PyTorch ConvTranspose2d layout / init scheme)
# ----------------------------------------------------------------------------
def init_params(key, in_maps, out_maps, up_kernel_size):
    k0, k1 = jax.random.split(key, 2)
    fan_in = in_maps * up_kernel_size * up_kernel_size
    bound = 1.0 / jnp.sqrt(jnp.float32(fan_in))
    wa = jax.random.uniform(k0, (in_maps, out_maps, up_kernel_size, up_kernel_size),
                            jnp.float32, -bound, bound)
    ba = jax.random.uniform(k1, (out_maps,), jnp.float32, -bound, bound)
    return dict(wa=wa, ba=ba)


if __name__ == "__main__":
    in_maps, out_maps, b_ch, up_kernel_size = 8, 4, 4, 2

    key = jax.random.PRNGKey(0)
    kp, ka1, kb1, ka2, kb2 = jax.random.split(key, 5)
    params = init_params(kp, in_maps, out_maps, up_kernel_size)

    fwd = jax.jit(functools.partial(up_copy_forward,
                                    up_kernel_size=up_kernel_size, stride=2))

    # Case 1: batch=2, f32 (grid parallel over batch).
    N, H, W = 2, 16, 16
    a1 = jax.random.normal(ka1, (N, in_maps, H, W), jnp.float32)
    b1 = jax.random.normal(kb1, (N, b_ch, 2 * H, 2 * W), jnp.float32)
    o1 = jax.block_until_ready(fwd(params, a1, b1))
    r1 = _lax_forward(params, a1, b1, up_kernel_size)
    assert o1.shape == (N, out_maps + b_ch, 2 * H, 2 * W), o1.shape
    assert jnp.allclose(o1, r1, atol=1e-4, rtol=1e-4), float(jnp.max(jnp.abs(o1 - r1)))

    # Case 2: batch=1 -> strip picker must keep >=2 grid steps (v7x: 2 TensorCores).
    a2 = jax.random.normal(ka2, (1, in_maps, H, W), jnp.float32)
    b2 = jax.random.normal(kb2, (1, b_ch, 2 * H, 2 * W), jnp.float32)
    o2 = jax.block_until_ready(fwd(params, a2, b2))
    r2 = _lax_forward(params, a2, b2, up_kernel_size)
    assert jnp.allclose(o2, r2, atol=1e-4, rtol=1e-4), float(jnp.max(jnp.abs(o2 - r2)))

    # Case 3: bf16 activations (memory-bound op -> halved bytes), f32 accumulate.
    a3 = a1.astype(jnp.bfloat16)
    b3 = b1.astype(jnp.bfloat16)
    o3 = jax.block_until_ready(fwd(params, a3, b3))
    r3 = _lax_forward(params, a3, b3, up_kernel_size)
    assert o3.dtype == jnp.bfloat16, o3.dtype
    assert jnp.allclose(o3.astype(jnp.float32), r3.astype(jnp.float32),
                        atol=5e-2, rtol=5e-2)

    print("KERNEL_OK")
</pallas_src>

<mosaic_0001>
module attributes {stable_mosaic.version = 11 : i64} {
  func.func @_subpixel_upconv_kernel(%arg0: i32, %arg1: i32, %arg2: memref<1x8x256xf32, #tpu.memory_space<vmem>>, %arg3: memref<16x8xf32, #tpu.memory_space<vmem>>, %arg4: memref<16x1xf32, #tpu.memory_space<vmem>>, %arg5: memref<1x16x256xf32, #tpu.memory_space<vmem>>) attributes {dimension_semantics = [#tpu.dimension_semantics<parallel>, #tpu.dimension_semantics<parallel>], iteration_bounds = array<i64: 2, 1>, scalar_prefetch = 0 : i64, scratch_operands = 0 : i64, tpu.core_type = #tpu.core_type<tc>, window_params = [{transform_indices = @transform_0, window_bounds = array<i64: 1, 8, 256>}, {pipeline_mode = #tpu.pipeline_mode<synchronous>, transform_indices = @transform_1, window_bounds = array<i64: 16, 8>}, {pipeline_mode = #tpu.pipeline_mode<synchronous>, transform_indices = @transform_2, window_bounds = array<i64: 16, 1>}, {transform_indices = @transform_3, window_bounds = array<i64: 1, 16, 256>}]} {
    %c0 = arith.constant 0 : index
    %c0_0 = arith.constant 0 : index
    %0 = vector.load %arg3[%c0, %c0_0] : memref<16x8xf32, #tpu.memory_space<vmem>>, vector<16x8xf32>
    %c0_1 = arith.constant 0 : index
    %c0_2 = arith.constant 0 : index
    %c0_3 = arith.constant 0 : index
    %1 = vector.load %arg2[%c0_1, %c0_2, %c0_3] : memref<1x8x256xf32, #tpu.memory_space<vmem>>, vector<1x8x256xf32>
    %2 = vector.shape_cast %1 : vector<1x8x256xf32> to vector<8x256xf32>
    %cst = arith.constant dense<0.000000e+00> : vector<16x256xf32>
    %3 = tpu.matmul %0, %2, %cst {dimension_numbers = #tpu.dot_dimension_numbers<[1], [0], [0], [1], [0, 0, 1, 1], [], []>} : vector<16x8xf32>, vector<8x256xf32>, vector<16x256xf32> -> vector<16x256xf32>
    %c0_4 = arith.constant 0 : index
    %c0_5 = arith.constant 0 : index
    %4 = vector.load %arg4[%c0_4, %c0_5] : memref<16x1xf32, #tpu.memory_space<vmem>>, vector<16x1xf32>
    %5 = vector.broadcast %4 : vector<16x1xf32> to vector<16x256xf32>
    %6 = arith.addf %3, %5 : vector<16x256xf32>
    %c0_6 = arith.constant 0 : index
    %c0_7 = arith.constant 0 : index
    %c0_8 = arith.constant 0 : index
    %7 = vector.load %arg5[%c0_6, %c0_7, %c0_8] : memref<1x16x256xf32, #tpu.memory_space<vmem>>, vector<1x16x256xf32>
    %8 = vector.shape_cast %7 : vector<1x16x256xf32> to vector<16x256xf32>
    %9 = vector.shape_cast %6 : vector<16x256xf32> to vector<1x16x256xf32>
    tpu.vector_store %arg5[%c0_6, %c0_7, %c0_8], %9 {strides = array<i32>} : memref<1x16x256xf32, #tpu.memory_space<vmem>>, vector<1x16x256xf32>,
    return
  }
  func.func @transform_0(%arg0: i32, %arg1: i32) -> (i32, i32, i32) {
    %c0_i32 = arith.constant 0 : i32
    %c0_i32_0 = arith.constant 0 : i32
    return %arg0, %c0_i32, %arg1 : i32, i32, i32
  }
  func.func @transform_1(%arg0: i32, %arg1: i32) -> (i32, i32) {
    %c0_i32 = arith.constant 0 : i32
    %c0_i32_0 = arith.constant 0 : i32
    %c0_i32_1 = arith.constant 0 : i32
    return %c0_i32, %c0_i32_0 : i32, i32
  }
  func.func @transform_2(%arg0: i32, %arg1: i32) -> (i32, i32) {
    %c0_i32 = arith.constant 0 : i32
    %c0_i32_0 = arith.constant 0 : i32
    %c0_i32_1 = arith.constant 0 : i32
    return %c0_i32, %c0_i32_0 : i32, i32
  }
  func.func @transform_3(%arg0: i32, %arg1: i32) -> (i32, i32, i32) {
    %c0_i32 = arith.constant 0 : i32
    %c0_i32_0 = arith.constant 0 : i32
    return %arg0, %c0_i32, %arg1 : i32, i32, i32
  }
}

</mosaic_0001>

<bundles_post_ra>
// kernel: up_copy_forward.1
= control target key start
LH: loop header
LB: loop body
LE: loop exit
PB: predicated region body
PF: predicated region fallthrough
CT: control target
= control target key end

     0   :  { %s460_s12 = smov 0   ;;  %s462_s13 = smov 0   ;;  %s505_s0 = inlined_call_operand.vmem [shape: f32[2,8,256], index: 0, kind: input, shape index: {}]   ;;  %s506_s1 = inlined_call_operand.vmem [shape: f32[16,8], index: 1, kind: input, shape index: {}]   ;;  %s507_s2 = inlined_call_operand.vmem [shape: f32[16,1], index: 2, kind: input, shape index: {}]   ;;  %s508_s3 = inlined_call_operand.vmem [shape: f32[2,16,256], index: 3, kind: output, shape index: {}]  }
   0x1   :  { %s464_s14 = smov 0  }
   0x2 LB: > { %s25_s15 = sadd.s32 1, %s433_s13  ;;  %p374_p0 = scmp.ge.s32.totalorder %s437_s14, 1  ;;  %s437_s14 = sphi %s464_s14, %s13_s14   ;;  %s433_s13 = sphi %s462_s13, %s510_s13   ;;  %s429_s12 = sphi %s460_s12, %s509_s12  }
   0x3   : > { %p27_p1 = scmp.ge.s32.totalorder %s25_s15, 2  ;;  %p158_p2 = scmp.lt.s32.totalorder %s437_s14, 3 }
   0x5   : > { %s512_s15 = smov (%p27_p1, %s25_s15), 0  ;;  %p159_p3 = pnand %p374_p0, %p158_p2 }
   0x6   : > { %p191_p4 = scmp.lt.s32.totalorder (!%p159_p3), %s429_s12, 1 }
   0x7   : > { %162 = sbr.rel (%p159_p3) target bundleno = 154 (0x9a), region = 32 }
   0xc   : > { %v214_v0 = vld [vmem:[%s507_s2] sm:$0xff]  ;;  %v439_v1 = vmov 0   ;;  %s514_s12 = smov (!%p191_p4, %s429_s12), 1  ;;  %vm226_vm0 = vcmask 64512   ;;  %v211_v5 = vld [vmem:[%s506_s1 + $0x8] sm:$0xff] }
   0xd   : > { %414 = vset.pattern.permute.xlu0 %v439_v1  ;;  %s385_s18 = sshll.u32 %s514_s12, 4  ;;  %v210_v2 = vld [vmem:[%s506_s1] sm:$0xff]  ;;  %v215_v6 = vld [vmem:[%s507_s2 + $0x8] sm:$0xff]  ;;  %s386_s28 = sshll.u32 %s514_s12, 5 }
   0xe   : > { %218 = vperm.xlu0 %414, %v214_v0   ;;  %s198_s21 = scalar_lea.vmem %s505_s0, %s385_s18  ;;  %s208_s4 = scalar_lea.vmem %s508_s3, %s386_s28 }
   0xf   : > { %v212_v3 = vld [vmem:[%s198_s21] sm:$0xff]  ;;  %v213_v4 = vld [vmem:[%s198_s21 + $0x8] sm:$0xff] }
  0x10   : > { %248 = vmatpush.msra.mxu0 %v212_v3  ;;  %387 = vmatpush.msra.mxu2 %v212_v3 }
  0x11   : > { %271 = vmatpush.msra.mxu1 %v213_v4  ;;  %388 = vmatpush.msra.mxu3 %v213_v4 }
  0x12   : > { %379 = vmatmul.msk.f32.vlgmr.msra.gmra.mxu0 %vm226_vm0, %v210_v2  ;;  %380 = vmatmul.msk.f32.vlgmr.msra.gmra.mxu2 %vm226_vm0, %v211_v5 }
  0x13   : > { %381 = vmatmul.msk.f32.vlgmr.msra.gmra.mxu1 %vm226_vm0, %v210_v2  ;;  %382 = vmatmul.msk.f32.vlgmr.msra.gmra.mxu3 %vm226_vm0, %v211_v5 }
  0x16   : > { %223 = vperm.xlu0 %414, %v215_v6  }
  0x80   : > { %v219_v7 = vpop.permute.xlu0 %218 }
  0x88   : > { %v224_v12 = vpop.permute.xlu0 %223 }
  0x8f   : > { %v250_v8 = vpop.f32.mrf.mxu0 }
  0x90   : > { %v251_v9 = vadd.f32 %v250_v8, %v219_v7  ;;  %v273_v10 = vpop.f32.mrf.mxu1 }
  0x91   : > { %v274_v11 = vadd.f32 %v273_v10, %v219_v7 }
  0x92   : > { %279 = vst [vmem:[%s208_s4] sm:$0xff] %v251_v9 }
  0x93   : > { %280 = vst [vmem:[%s208_s4 + $0x8] sm:$0xff] %v274_v11 }
  0x95   : > { %v253_v13 = vpop.f32.mrf.mxu2 }
  0x96   : > { %v254_v14 = vadd.f32 %v253_v13, %v224_v12  ;;  %v276_v15 = vpop.f32.mrf.mxu3 }
  0x97   : > { %v277_v16 = vadd.f32 %v276_v15, %v224_v12 }
  0x98   : > { %281 = vst [vmem:[%s208_s4 + $0x10] sm:$0xff] %v254_v14 }
  0x99   : > { %282 = vst [vmem:[%s208_s4 + $0x18] sm:$0xff] %v277_v16 }
  0x9a PF: > { %s13_s14 = sadd.s32 1, %s437_s14   ;;  %s509_s12 = smov %s433_s13 }
  0x9b   : > { %p10_p5 = scmp.ge.s32.totalorder %s13_s14, 4   ;;  %s510_s13 = smov %s512_s15 }
  0x9d   :  { %12 = sbr.rel (!%p10_p5) target bundleno = 2 (0x2), region = 62 }

</bundles_post_ra>
